<compile_context>
chip_gen: v7x
topology: tpu7x:2x2x1
jax: 0.10.0
libtpu: 0.0.40
codegen_flags: <defaults>
</compile_context>

<pallas_src>
import functools

import jax
import jax.numpy as jnp
from jax.experimental import pallas as pl
from jax.experimental.pallas import tpu as pltpu

# ---- model dims (from the PyTorch module) ----
D_IN, D_H, D_CODE, D_OUT = 14, 16, 3, 11
D_INP = 16    # input feature width, host-padded once per call (14 -> 16)
PAD = 128     # lane-aligned width used for hidden activations / resident weights


def _round_up(n, m):
    return ((n + m - 1) // m) * m


# --------------------------------------------------------------------------------------
# Kernel: one batch tile per grid step; encoder + fused(code,decoder) + out, all in VMEM.
# --------------------------------------------------------------------------------------
def dnn_ae_kernel(x_ref, w1_ref, b1_ref, w23_ref, b23_ref, w4_ref, b4_ref, out_ref):
    wdt = w1_ref.dtype  # f32 by default; bf16 if prepare_params(weight_dtype=bf16)
    x = x_ref[...]                                                    # (tb, 16) f32

    # enc = tanh(encoder(x))            (tb,16) x (16,128) ; K=16 costs one MXU pass
    enc = jnp.tanh(
        jnp.dot(x.astype(wdt), w1_ref[...], preferred_element_type=jnp.float32)
        + b1_ref[...]
    )
    # dec = tanh(decoder(code(enc)))    code layer has no activation -> fused W23/b23
    dec = jnp.tanh(
        jnp.dot(enc.astype(wdt), w23_ref[...], preferred_element_type=jnp.float32)
        + b23_ref[...]
    )
    # out = tanh(out(dec))[:, :11]      narrow lane-masked store straight to the HBM tile
    z = (
        jnp.dot(dec.astype(wdt), w4_ref[...], preferred_element_type=jnp.float32)
        + b4_ref[...]
    )
    out_ref[...] = jnp.tanh(z[:, :D_OUT]).astype(out_ref.dtype)


# --------------------------------------------------------------------------------------
# One-time parameter prep (hoisted out of the per-call path). Also fuses code+decoder.
# --------------------------------------------------------------------------------------
def prepare_params(params, weight_dtype=jnp.float32):
    """Pad weights/biases once and fuse the activation-free code layer into the decoder.
    weight_dtype=bf16 halves resident weight bytes and runs the MXU at bf16 rate; keep
    f32 (default) when exact 1e-5 matching vs. the f32 reference is required."""
    def pad_to(a, shape, dtype):
        a = jnp.asarray(a, dtype)
        out = jnp.zeros(shape, dtype)
        return out.at[tuple(slice(0, s) for s in a.shape)].set(a)

    w1 = jnp.asarray(params["w1"], jnp.float32)
    b1 = jnp.asarray(params["b1"], jnp.float32)
    w2 = jnp.asarray(params["w2"], jnp.float32)
    b2 = jnp.asarray(params["b2"], jnp.float32)
    w3 = jnp.asarray(params["w3"], jnp.float32)
    b3 = jnp.asarray(params["b3"], jnp.float32)
    w4 = jnp.asarray(params["w4"], jnp.float32)
    b4 = jnp.asarray(params["b4"], jnp.float32)

    # code layer (no activation) folded into the decoder, in f32 before any cast.
    w23 = w2 @ w3              # (16, 3) @ (3, 16) -> (16, 16)
    b23 = b2 @ w3 + b3         # (16,)

    return (
        pad_to(w1, (D_INP, PAD), weight_dtype),      # (16, 128)
        pad_to(b1[None, :], (1, PAD), jnp.float32),
        pad_to(w23, (PAD, PAD), weight_dtype),       # (128, 128)
        pad_to(b23[None, :], (1, PAD), jnp.float32),
        pad_to(w4, (PAD, PAD), weight_dtype),        # (128, 128)
        pad_to(b4[None, :], (1, PAD), jnp.float32),
    )


# --------------------------------------------------------------------------------------
# Forward wrapper: 1-D grid over batch, VMEM-resident weights, narrow (B, 11) output.
# --------------------------------------------------------------------------------------
def dnn_ae_forward(x, prepared, *, block_batch=8192):
    """x: (B, 14) float32. prepared: output of prepare_params(). Returns (B, 11)."""
    B = x.shape[0]

    # Batch tile: multiple of 8 sublanes; split into >=2 tiles whenever B > 8 so the
    # "parallel" batch axis actually shards across both v7x TensorCores and the
    # input/output DMAs have something to pipeline against.
    tb = min(block_batch, max(8, _round_up(pl.cdiv(B, 2), 8)))
    bp = _round_up(max(B, tb), tb)

    # Single host-side pad: batch rows to a tile multiple, features 14 -> 16.
    x16 = jnp.pad(x, ((0, bp - B), (0, D_INP - D_IN)))

    grid = (bp // tb,)

    w1_spec = pl.BlockSpec((D_INP, PAD), lambda i: (0, 0))  # constant index -> resident
    w_spec = pl.BlockSpec((PAD, PAD), lambda i: (0, 0))
    b_spec = pl.BlockSpec((1, PAD), lambda i: (0, 0))
    in_specs = [
        pl.BlockSpec((tb, D_INP), lambda i: (i, 0)),        # x: streamed per batch tile
        w1_spec, b_spec, w_spec, b_spec, w_spec, b_spec,
    ]
    # Narrow output: last block dim == full array dim (11), so no 128-lane padding and
    # no epilogue slice; the 11-lane masked store is nowhere near saturating the vst slot.
    out_spec = pl.BlockSpec((tb, D_OUT), lambda i: (i, 0))

    wbytes = sum(int(jnp.dtype(a.dtype).itemsize) * int(a.size) for a in prepared)
    cost = pl.CostEstimate(
        flops=2 * bp * (D_INP * PAD + PAD * PAD + PAD * PAD),   # 3 fused matmuls / row
        transcendentals=bp * (2 * PAD + D_OUT),                 # tanh on enc, dec, out
        bytes_accessed=4 * bp * D_INP + 4 * bp * D_OUT + wbytes,
    )

    out = pl.pallas_call(
        dnn_ae_kernel,
        out_shape=jax.ShapeDtypeStruct((bp, D_OUT), jnp.float32),
        grid=grid,
        in_specs=in_specs,
        out_specs=out_spec,
        compiler_params=pltpu.CompilerParams(
            dimension_semantics=("parallel",),          # shard batch tiles across TCs
            vmem_limit_bytes=32 * 1024 * 1024,          # explicit; safe on v5e/v6e/v7x
        ),
        cost_estimate=cost,
    )(x16, *prepared)

    return out if bp == B else out[:B]


# --------------------------------------------------------------------------------------
# Deterministic synthetic parameters + pure-JAX reference (unfused, matches PyTorch).
# --------------------------------------------------------------------------------------
def init_params(key):
    """Torch-Linear-shaped params, stored as (in, out) so y = x @ W + b."""
    ks = jax.random.split(key, 8)

    def lin(kw, kb, fan_in, fan_out):
        bound = 1.0 / jnp.sqrt(fan_in)  # torch default init U(-1/sqrt(fan_in), +)
        w = jax.random.uniform(kw, (fan_in, fan_out), jnp.float32, -bound, bound)
        b = jax.random.uniform(kb, (fan_out,), jnp.float32, -bound, bound)
        return w, b

    w1, b1 = lin(ks[0], ks[1], D_IN, D_H)     # encoder: 14 -> 16
    w2, b2 = lin(ks[2], ks[3], D_H, D_CODE)   # code:    16 -> 3
    w3, b3 = lin(ks[4], ks[5], D_CODE, D_H)   # decoder:  3 -> 16
    w4, b4 = lin(ks[6], ks[7], D_H, D_OUT)    # out:     16 -> 11
    return dict(w1=w1, b1=b1, w2=w2, b2=b2, w3=w3, b3=b3, w4=w4, b4=b4)


def dnn_ae_reference(x, p):
    enc = jnp.tanh(x @ p["w1"] + p["b1"])
    code = enc @ p["w2"] + p["b2"]
    dec = jnp.tanh(code @ p["w3"] + p["b3"])
    return jnp.tanh(dec @ p["w4"] + p["b4"])


if __name__ == "__main__":
    key = jax.random.PRNGKey(0)
    k_params, k_x = jax.random.split(key)

    params = init_params(k_params)
    x = jax.random.normal(k_x, (8, D_IN), jnp.float32)   # batch=8, features=14

    # One-time padded/fused parameter prep (hoisted out of the hot path). f32 so the
    # 1e-5 check below is meaningful; use weight_dtype=jnp.bfloat16 for production.
    prepared = prepare_params(params)

    fwd = jax.jit(functools.partial(dnn_ae_forward, prepared=prepared))
    out = jax.block_until_ready(fwd(x))

    ref = dnn_ae_reference(x, params)
    assert out.shape == (8, D_OUT)
    assert jnp.allclose(out, ref, atol=1e-5, rtol=1e-5), "mismatch vs reference"

    print("KERNEL_OK")
</pallas_src>

<mosaic_0001>
module attributes {stable_mosaic.version = 11 : i64} {
  func.func @dnn_ae_kernel(%arg0: i32, %arg1: memref<8x16xf32, #tpu.memory_space<vmem>>, %arg2: memref<16x128xf32, #tpu.memory_space<vmem>>, %arg3: memref<1x128xf32, #tpu.memory_space<vmem>>, %arg4: memref<128x128xf32, #tpu.memory_space<vmem>>, %arg5: memref<1x128xf32, #tpu.memory_space<vmem>>, %arg6: memref<128x128xf32, #tpu.memory_space<vmem>>, %arg7: memref<1x128xf32, #tpu.memory_space<vmem>>, %arg8: memref<8x11xf32, #tpu.memory_space<vmem>>) attributes {dimension_semantics = [#tpu.dimension_semantics<parallel>], iteration_bounds = array<i64: 1>, scalar_prefetch = 0 : i64, scratch_operands = 0 : i64, tpu.core_type = #tpu.core_type<tc>, window_params = [{transform_indices = @transform_0, window_bounds = array<i64: 8, 16>}, {pipeline_mode = #tpu.pipeline_mode<synchronous>, transform_indices = @transform_1, window_bounds = array<i64: 16, 128>}, {pipeline_mode = #tpu.pipeline_mode<synchronous>, transform_indices = @transform_2, window_bounds = array<i64: 1, 128>}, {pipeline_mode = #tpu.pipeline_mode<synchronous>, transform_indices = @transform_3, window_bounds = array<i64: 128, 128>}, {pipeline_mode = #tpu.pipeline_mode<synchronous>, transform_indices = @transform_4, window_bounds = array<i64: 1, 128>}, {pipeline_mode = #tpu.pipeline_mode<synchronous>, transform_indices = @transform_5, window_bounds = array<i64: 128, 128>}, {pipeline_mode = #tpu.pipeline_mode<synchronous>, transform_indices = @transform_6, window_bounds = array<i64: 1, 128>}, {transform_indices = @transform_7, window_bounds = array<i64: 8, 11>}]} {
    %c0 = arith.constant 0 : index
    %c0_0 = arith.constant 0 : index
    %0 = vector.load %arg1[%c0, %c0_0] : memref<8x16xf32, #tpu.memory_space<vmem>>, vector<8x16xf32>
    %c0_1 = arith.constant 0 : index
    %c0_2 = arith.constant 0 : index
    %1 = vector.load %arg2[%c0_1, %c0_2] : memref<16x128xf32, #tpu.memory_space<vmem>>, vector<16x128xf32>
    %cst = arith.constant dense<0.000000e+00> : vector<8x128xf32>
    %2 = tpu.matmul %0, %1, %cst {dimension_numbers = #tpu.dot_dimension_numbers<[1], [0], [0], [1], [0, 0, 1, 1], [], []>} : vector<8x16xf32>, vector<16x128xf32>, vector<8x128xf32> -> vector<8x128xf32>
    %c0_3 = arith.constant 0 : index
    %c0_4 = arith.constant 0 : index
    %3 = vector.load %arg3[%c0_3, %c0_4] : memref<1x128xf32, #tpu.memory_space<vmem>>, vector<1x128xf32>
    %4 = vector.broadcast %3 : vector<1x128xf32> to vector<8x128xf32>
    %5 = arith.addf %2, %4 : vector<8x128xf32>
    %6 = math.tanh %5 : vector<8x128xf32>
    %c0_5 = arith.constant 0 : index
    %c0_6 = arith.constant 0 : index
    %7 = vector.load %arg4[%c0_5, %c0_6] : memref<128x128xf32, #tpu.memory_space<vmem>>, vector<128x128xf32>
    %cst_7 = arith.constant dense<0.000000e+00> : vector<8x128xf32>
    %8 = tpu.matmul %6, %7, %cst_7 {dimension_numbers = #tpu.dot_dimension_numbers<[1], [0], [0], [1], [0, 0, 1, 1], [], []>} : vector<8x128xf32>, vector<128x128xf32>, vector<8x128xf32> -> vector<8x128xf32>
    %c0_8 = arith.constant 0 : index
    %c0_9 = arith.constant 0 : index
    %9 = vector.load %arg5[%c0_8, %c0_9] : memref<1x128xf32, #tpu.memory_space<vmem>>, vector<1x128xf32>
    %10 = vector.broadcast %9 : vector<1x128xf32> to vector<8x128xf32>
    %11 = arith.addf %8, %10 : vector<8x128xf32>
    %12 = math.tanh %11 : vector<8x128xf32>
    %c0_10 = arith.constant 0 : index
    %c0_11 = arith.constant 0 : index
    %13 = vector.load %arg6[%c0_10, %c0_11] : memref<128x128xf32, #tpu.memory_space<vmem>>, vector<128x128xf32>
    %cst_12 = arith.constant dense<0.000000e+00> : vector<8x128xf32>
    %14 = tpu.matmul %12, %13, %cst_12 {dimension_numbers = #tpu.dot_dimension_numbers<[1], [0], [0], [1], [0, 0, 1, 1], [], []>} : vector<8x128xf32>, vector<128x128xf32>, vector<8x128xf32> -> vector<8x128xf32>
    %c0_13 = arith.constant 0 : index
    %c0_14 = arith.constant 0 : index
    %15 = vector.load %arg7[%c0_13, %c0_14] : memref<1x128xf32, #tpu.memory_space<vmem>>, vector<1x128xf32>
    %16 = vector.broadcast %15 : vector<1x128xf32> to vector<8x128xf32>
    %17 = arith.addf %14, %16 : vector<8x128xf32>
    %18 = vector.extract_strided_slice %17 {offsets = [0, 0], sizes = [8, 11], strides = [1, 1]} : vector<8x128xf32> to vector<8x11xf32>
    %19 = math.tanh %18 : vector<8x11xf32>
    %c0_15 = arith.constant 0 : index
    %c0_16 = arith.constant 0 : index
    %20 = vector.load %arg8[%c0_15, %c0_16] : memref<8x11xf32, #tpu.memory_space<vmem>>, vector<8x11xf32>
    tpu.vector_store %arg8[%c0_15, %c0_16], %19 {strides = array<i32>} : memref<8x11xf32, #tpu.memory_space<vmem>>, vector<8x11xf32>,
    return
  }
  func.func @transform_0(%arg0: i32) -> (i32, i32) {
    %c0_i32 = arith.constant 0 : i32
    %c0_i32_0 = arith.constant 0 : i32
    return %arg0, %c0_i32 : i32, i32
  }
  func.func @transform_1(%arg0: i32) -> (i32, i32) {
    %c0_i32 = arith.constant 0 : i32
    %c0_i32_0 = arith.constant 0 : i32
    %c0_i32_1 = arith.constant 0 : i32
    return %c0_i32, %c0_i32_0 : i32, i32
  }
  func.func @transform_2(%arg0: i32) -> (i32, i32) {
    %c0_i32 = arith.constant 0 : i32
    %c0_i32_0 = arith.constant 0 : i32
    %c0_i32_1 = arith.constant 0 : i32
    return %c0_i32, %c0_i32_0 : i32, i32
  }
  func.func @transform_3(%arg0: i32) -> (i32, i32) {
    %c0_i32 = arith.constant 0 : i32
    %c0_i32_0 = arith.constant 0 : i32
    %c0_i32_1 = arith.constant 0 : i32
    return %c0_i32, %c0_i32_0 : i32, i32
  }
  func.func @transform_4(%arg0: i32) -> (i32, i32) {
    %c0_i32 = arith.constant 0 : i32
    %c0_i32_0 = arith.constant 0 : i32
    %c0_i32_1 = arith.constant 0 : i32
    return %c0_i32, %c0_i32_0 : i32, i32
  }
  func.func @transform_5(%arg0: i32) -> (i32, i32) {
    %c0_i32 = arith.constant 0 : i32
    %c0_i32_0 = arith.constant 0 : i32
    %c0_i32_1 = arith.constant 0 : i32
    return %c0_i32, %c0_i32_0 : i32, i32
  }
  func.func @transform_6(%arg0: i32) -> (i32, i32) {
    %c0_i32 = arith.constant 0 : i32
    %c0_i32_0 = arith.constant 0 : i32
    %c0_i32_1 = arith.constant 0 : i32
    return %c0_i32, %c0_i32_0 : i32, i32
  }
  func.func @transform_7(%arg0: i32) -> (i32, i32) {
    %c0_i32 = arith.constant 0 : i32
    %c0_i32_0 = arith.constant 0 : i32
    return %arg0, %c0_i32 : i32, i32
  }
}

</mosaic_0001>

<bundles_post_ra>
// kernel: dnn_ae_forward.1
= control target key start
LH: loop header
LB: loop body
LE: loop exit
PB: predicated region body
PF: predicated region fallthrough
CT: control target
= control target key end

     0   :  { %12 = vsyncpa [#allocation3], 0  ;;  %s723_s0 = inlined_call_operand.vmem [shape: f32[8,16], index: 0, kind: input, shape index: {}]   ;;  %s724_s1 = inlined_call_operand.vmem [shape: f32[16,128], index: 1, kind: input, shape index: {}]   ;;  %s725_s2 = inlined_call_operand.vmem [shape: f32[1,128], index: 2, kind: input, shape index: {}]   ;;  %s726_s3 = inlined_call_operand.hbm [shape: f32[128,128], index: 3, kind: input, shape index: {}]   ;;  %s727_s4 = inlined_call_operand.vmem [shape: f32[1,128], index: 4, kind: input, shape index: {}]   ;;  %s728_s5 = inlined_call_operand.hbm [shape: f32[128,128], index: 5, kind: input, shape index: {}]   ;;  %s729_s6 = inlined_call_operand.vmem [shape: f32[1,128], index: 6, kind: input, shape index: {}]   ;;  %s730_s7 = inlined_call_operand.hbm [shape: f32[8,11], index: 7, kind: output, shape index: {}]  }
   0x1   :  { %13 = vsyncpa [#allocation6], 0 }
   0x2   :  { %14 = vsyncpa [#allocation4], 0  ;;  %s601_s24 = smov [#allocation2]   ;;  %s529_s28 = scalar_lea.hbm %s726_s3, 2048 }
   0x3   :  { %s26_s25 = sshll.u32 %s601_s24, 4  ;;  %p530_p0 = scmp.ne.s32.totalorder %s726_s3, %s529_s28  ;;  %s27_s25 = int_to_ptr.vmem [resolvable:$true] %s26_s25 }
   0x4   :  { %p533_p1 = scmp.lt.u32.totalorder %s529_s28, %s726_s3 }
   0x6   :  { %p535_p2 = pnand %p533_p1, %p530_p0 }
   0x8   :  { %538 = shalt.err (!%p535_p2)
}
   0x9   :  { %s539_s10 = scalar_lea.vmem %s27_s25, 2048  ;;  %p544_p4 = scmp.lt.s32.totalorder %s27_s25, %s27_s25 }
   0xa   :  { %p540_p3 = scmp.ne.s32.totalorder %s27_s25, %s539_s10  ;;  %p545_p5 = scmp.lt.s32.totalorder %s539_s10, %s539_s10 }
   0xc   :  { %p546_p6 = por %p545_p5, %p544_p4 }
   0xe   :  { %p547_p7 = pnand %p546_p6, %p540_p3 }
  0x10   :  { %550 = shalt.err (!%p547_p7)
}
  0x11   :  { %s602_s11 = smov 128   ;;  %s603_s12 = smov 8  }
  0x12   :  { %32 = dma.hbm_to_vmem [thread:$0]  %s726_s3, 2048, %s27_s25, [#allocation3], %s602_s11, %s602_s11, %s603_s12  }
  0x13   :  { %s604_s15 = smov [#allocation5]   ;;  %s551_s19 = scalar_lea.hbm %s728_s5, 2048 }
  0x14   :  { %s40_s16 = sshll.u32 %s604_s15, 4  ;;  %p552_p8 = scmp.ne.s32.totalorder %s728_s5, %s551_s19  ;;  %s41_s16 = int_to_ptr.vmem [resolvable:$true] %s40_s16 }
  0x15   :  { %p555_p9 = scmp.lt.u32.totalorder %s551_s19, %s728_s5 }
  0x17   :  { %p557_p10 = pnand %p555_p9, %p552_p8 }
  0x19   :  { %560 = shalt.err (!%p557_p10)
}
  0x1a   :  { %s561_s24 = scalar_lea.vmem %s41_s16, 2048  ;;  %p566_p12 = scmp.lt.s32.totalorder %s41_s16, %s41_s16 }
  0x1b   :  { %p562_p11 = scmp.ne.s32.totalorder %s41_s16, %s561_s24  ;;  %p567_p13 = scmp.lt.s32.totalorder %s561_s24, %s561_s24 }
  0x1d   :  { %p568_p0 = por %p567_p13, %p566_p12 }
  0x1f   :  { %p569_p1 = pnand %p568_p0, %p562_p11 }
  0x21   :  { %572 = shalt.err (!%p569_p1)
}
  0x22   :  { %46 = dma.hbm_to_vmem [thread:$0]  %s728_s5, 2048, %s41_s16, [#allocation6], %s602_s11, %s602_s11, %s603_s12  }
  0x23   :  { %595 = dma.done.wait [#allocation3], 2048  }
  0x24   :  { %596 = vsyncadd [#allocation3], 4294965248 }
  0x25   :  { %597 = dma.done.wait [#allocation6], 2048  }
  0x26   :  { %598 = vsyncadd [#allocation6], 4294965248  ;;  %v605_v0 = vmov 0.0|0.0   ;;  %vm606_vm0 = vmmov 0   ;;  %v607_v1 = vmov 0.0   ;;  %v56_v2 = vld [vmem:[%s724_s1] sm:$0xff] }
  0x27   :  { %464 = vmatprep.subr.bf16.mxu0 %v605_v0  ;;  %391 = vmatprep.mubr.msk.f32.mxu0 %vm606_vm0, %v607_v1  ;;  %v57_v3 = vld [vmem:[%s724_s1 + $0x8] sm:$0xff]  ;;  %v140_v5 = vld [vmem:[#allocation2] sm:$0xff]  ;;  %v141_v6 = vld [vmem:[#allocation2 + $0x8] sm:$0xff]  ;;  %vm65_vm1 = vcmask 130048   ;;  %s608_s11 = smov [#allocation7]   ;;  %vm328_vm2 = vcmask 89088  }
  0x28   :  { %467 = vmatprep.subr.bf16.mxu1 %v605_v0  ;;  %426 = vmatprep.mubr.msk.f32.mxu1 %vm606_vm0, %v607_v1  ;;  %v465_v4 = vpack.c.bf16 %v57_v3, %v56_v2  ;;  %v142_v7 = vld [vmem:[#allocation2 + $0x10] sm:$0xff]  ;;  %v468_v8 = vpack.c.bf16 %v141_v6, %v140_v5  ;;  %v143_v9 = vld [vmem:[#allocation2 + $0x18] sm:$0xff]  ;;  %v144_v12 = vld [vmem:[#allocation2 + $0x20] sm:$0xff]  ;;  %s336_s12 = sshll.u32 %s608_s11, 4  ;;  %s337_s12 = int_to_ptr.vmem [resolvable:$true] %s336_s12 }
  0x29   :  { %v55_v10 = vld [vmem:[%s723_s0] sm:$0xff]  ;;  %v471_v11 = vpack.c.bf16 %v143_v9, %v142_v7  ;;  %v145_v13 = vld [vmem:[#allocation2 + $0x28] sm:$0xff]  ;;  %v147_v16 = vld [vmem:[#allocation2 + $0x38] sm:$0xff]  ;;  %p578_p3 = scmp.lt.s32.totalorder %s337_s12, %s337_s12 }
  0x2a   :  { %466 = vmatpush3.bf16.msra.mxu0 %v465_v4  ;;  %469 = vmatpush3.bf16.msra.mxu1 %v468_v8  ;;  %v474_v14 = vpack.c.bf16 %v145_v13, %v144_v12  ;;  %v146_v15 = vld [vmem:[#allocation2 + $0x30] sm:$0xff]  ;;  %v148_v18 = vld [vmem:[#allocation2 + $0x40] sm:$0xff]  ;;  %v149_v19 = vld [vmem:[#allocation2 + $0x48] sm:$0xff] }
  0x2b   :  { %491 = vmatprep.subr.bf16.mxu0 %v605_v0  ;;  %470 = vmatprep.subr.bf16.mxu1 %v605_v0  ;;  %v477_v17 = vpack.c.bf16 %v147_v16, %v146_v15  ;;  %v480_v20 = vpack.c.bf16 %v149_v19, %v148_v18  ;;  %v150_v21 = vld [vmem:[#allocation2 + $0x50] sm:$0xff]  ;;  %v151_v22 = vld [vmem:[#allocation2 + $0x58] sm:$0xff]  ;;  %v152_v24 = vld [vmem:[#allocation2 + $0x60] sm:$0xff] }
  0x2c   :  { %v483_v23 = vpack.c.bf16 %v151_v22, %v150_v21  ;;  %v153_v25 = vld [vmem:[#allocation2 + $0x68] sm:$0xff]  ;;  %v154_v27 = vld [vmem:[#allocation2 + $0x70] sm:$0xff]  ;;  %v155_v28 = vld [vmem:[#allocation2 + $0x78] sm:$0xff] }
  0x2d   :  { %392 = vmatmul.mubr.msk.f32.vlgmr.msra.gmra.mrb[0].mxu0 %vm65_vm1, %v55_v10  ;;  %v486_v26 = vpack.c.bf16 %v153_v25, %v152_v24  ;;  %v489_v29 = vpack.c.bf16 %v155_v28, %v154_v27  ;;  %v234_v30 = vld [vmem:[#allocation5] sm:$0xff]  ;;  %v235_v31 = vld [vmem:[#allocation5 + $0x8] sm:$0xff]  ;;  %v236_v32 = vld [vmem:[#allocation5 + $0x10] sm:$0xff] }
  0x2e   :  { %461 = vmatprep.mubr.msk.f32.mxu0 %vm606_vm0, %v607_v1  ;;  %472 = vmatpush3.bf16.msra.mxu1 %v471_v11  ;;  %v492_v33 = vpack.c.bf16 %v235_v31, %v234_v30  ;;  %v237_v34 = vld [vmem:[#allocation5 + $0x18] sm:$0xff]  ;;  %v238_v36 = vld [vmem:[#allocation5 + $0x20] sm:$0xff]  ;;  %v239_v37 = vld [vmem:[#allocation5 + $0x28] sm:$0xff] }
  0x2f   :  { %473 = vmatprep.subr.bf16.mxu1 %v605_v0  ;;  %v495_v35 = vpack.c.bf16 %v237_v34, %v236_v32  ;;  %v498_v38 = vpack.c.bf16 %v239_v37, %v238_v36  ;;  %v240_v39 = vld [vmem:[#allocation5 + $0x30] sm:$0xff]  ;;  %v241_v40 = vld [vmem:[#allocation5 + $0x38] sm:$0xff]  ;;  %v242_v42 = vld [vmem:[#allocation5 + $0x40] sm:$0xff] }
  0x30   :  { %493 = vmatpush3.bf16.msra.mxu0 %v492_v33  ;;  %v501_v41 = vpack.c.bf16 %v241_v40, %v240_v39  ;;  %v243_v43 = vld [vmem:[#allocation5 + $0x48] sm:$0xff]  ;;  %v346_v45 = vld [vmem:[%s725_s2] ss:$0 sm:$0xff]  ;;  %v245_v51 = vld [vmem:[#allocation5 + $0x58] sm:$0xff] }
  0x31   :  { %494 = vmatprep.subr.bf16.mxu0 %v605_v0  ;;  %v504_v44 = vpack.c.bf16 %v243_v43, %v242_v42  ;;  %v244_v50 = vld [vmem:[#allocation5 + $0x50] sm:$0xff]  ;;  %v246_v53 = vld [vmem:[#allocation5 + $0x60] sm:$0xff]  ;;  %v247_v54 = vld [vmem:[#allocation5 + $0x68] sm:$0xff] }
  0x32   :  { %475 = vmatpush3.bf16.msra.mxu1 %v474_v14  ;;  %v507_v52 = vpack.c.bf16 %v245_v51, %v244_v50  ;;  %v510_v55 = vpack.c.bf16 %v247_v54, %v246_v53  ;;  %v248_v56 = vld [vmem:[#allocation5 + $0x70] sm:$0xff]  ;;  %v249_v57 = vld [vmem:[#allocation5 + $0x78] sm:$0xff] }
  0x33   :  { %476 = vmatprep.subr.bf16.mxu1 %v605_v0  ;;  %v513_v58 = vpack.c.bf16 %v249_v57, %v248_v56  ;;  %v348_v59 = vld [vmem:[%s727_s4] ss:$0 sm:$0xff]  ;;  %s573_s4 = scalar_lea.vmem %s337_s12, 128 }
  0x34   :  { %496 = vmatpush3.bf16.msra.mxu0 %v495_v35  ;;  %v349_v1 = vld [vmem:[%s729_s6] ss:$0 sm:$0xff]  ;;  %p574_p2 = scmp.ne.s32.totalorder %s337_s12, %s573_s4  ;;  %p579_p4 = scmp.lt.s32.totalorder %s573_s4, %s573_s4 }
  0x35   :  { %497 = vmatprep.subr.bf16.mxu0 %v605_v0 }
  0x36   :  { %478 = vmatpush3.bf16.msra.mxu1 %v477_v17  ;;  %p580_p5 = por %p579_p4, %p578_p3 }
  0x37   :  { %479 = vmatprep.subr.bf16.mxu1 %v605_v0 }
  0x38   :  { %499 = vmatpush3.bf16.msra.mxu0 %v498_v38  ;;  %p581_p6 = pnand %p580_p5, %p574_p2 }
  0x39   :  { %500 = vmatprep.subr.bf16.mxu0 %v605_v0 }
  0x3a   :  { %481 = vmatpush3.bf16.msra.mxu1 %v480_v20 }
  0x3b   :  { %482 = vmatprep.subr.bf16.mxu1 %v605_v0 }
  0x3c   :  { %502 = vmatpush3.bf16.msra.mxu0 %v501_v41 }
  0x3d   :  { %503 = vmatprep.subr.bf16.mxu0 %v605_v0 }
  0x3e   :  { %484 = vmatpush3.bf16.msra.mxu1 %v483_v23 }
  0x3f   :  { %485 = vmatprep.subr.bf16.mxu1 %v605_v0 }
  0x40   :  { %505 = vmatpush3.bf16.msra.mxu0 %v504_v44 }
  0x41   :  { %506 = vmatprep.subr.bf16.mxu0 %v605_v0 }
  0x42   :  { %487 = vmatpush3.bf16.msra.mxu1 %v486_v26 }
  0x43   :  { %488 = vmatprep.subr.bf16.mxu1 %v605_v0 }
  0x44   :  { %508 = vmatpush3.bf16.msra.mxu0 %v507_v52 }
  0x45   :  { %509 = vmatprep.subr.bf16.mxu0 %v605_v0 }
  0x46   :  { %490 = vmatpush3.bf16.msra.mxu1 %v489_v29 }
  0x48   :  { %511 = vmatpush3.bf16.msra.mxu0 %v510_v55 }
  0x49   :  { %512 = vmatprep.subr.bf16.mxu0 %v605_v0 }
  0x4c   :  { %514 = vmatpush3.bf16.msra.mxu0 %v513_v58 }
 0x100   :  { %v135_v46 = vpop.f32.mrb[0].mxu0 }
 0x101   :  { %v136_v47 = vadd.f32 %v346_v45, %v135_v46  ;;  %v393_v48 = vpop.f32.mrb[1].mxu0 }
 0x103   :  { %523 = vtanh.f32 %v136_v47 }
 0x10d   :  { %v524_v49 = vpop.eup %523 }
 0x10e   :  { %427 = vmatmul.mubr.f32.vlgmr.msra.gmra.mrb[0].mxu1 %v524_v49 }
 0x1e1   :  { %v229_v60 = vpop.f32.mrb[0].mxu1 }
 0x1e2   :  { %v230_v61 = vadd.f32 %v348_v59, %v229_v60  ;;  %v428_v62 = vpop.f32.mrb[1].mxu1 }
 0x1e4   :  { %525 = vtanh.f32 %v230_v61 }
 0x1ee   :  { %v526_v63 = vpop.eup %525 }
 0x1ef   :  { %462 = vmatmul.mubr.f32.vlgmr.msra.gmra.mrb[2].mxu0 %v526_v63 }
 0x2c2   :  { %v323_v2 = vpop.f32.mrb[2].mxu0 }
 0x2c3   :  { %v324_v3 = vadd.f32 %v349_v1, %v323_v2  ;;  %v463_v4 = vpop.f32.mrb[3].mxu0 }
 0x2c5   :  { %527 = vtanh.f32 %v324_v3 }
 0x2cf   :  { %v528_v0 = vpop.eup %527 }
 0x2d0   :  { %329 = vst.msk [vmem:[#allocation7] sm:$0xff] %vm328_vm2, %v528_v0 }
 0x2d1   :  { %584 = shalt.err (!%p581_p6)
}
 0x2d2   :  { %s585_s6 = scalar_lea.hbm %s730_s7, 128 }
 0x2d3   :  { %p586_p7 = scmp.ne.s32.totalorder %s730_s7, %s585_s6  ;;  %p589_p8 = scmp.lt.u32.totalorder %s585_s6, %s730_s7 }
 0x2d5   :  { %p591_p9 = pnand %p589_p8, %p586_p7 }
 0x2d7   :  { %594 = shalt.err (!%p591_p9)
}
 0x2d8   :  { %339 = dma.vmem_to_hbm [thread:$0]  %s337_s12, 128, %s730_s7, [#allocation4]  }
 0x2d9   :  { %599 = dma.done.wait [#allocation4], 128  }
 0x2da   :  { %600 = vsyncadd [#allocation4], 4294967168 }
 0x2db   :  { %343 = vsyncpa [#allocation3], 1 }
 0x2dc   :  { %344 = vsyncpa [#allocation6], 1 }
 0x2dd   :  { %345 = vsyncpa [#allocation4], 1 }

</bundles_post_ra>
